<compile_context>
chip_gen: v7x
topology: tpu7x:2x2x1
jax: 0.10.0
libtpu: 0.0.40
codegen_flags: <defaults>
</compile_context>

<pallas_src>
import jax
import jax.numpy as jnp
from jax.experimental import pallas as pl
from jax.experimental.pallas import tpu as pltpu

HIDDEN = 32
LEARN_EDGE_ATT = True
TILE_E = 2048          # default row tile (edges) per grid step
LANE = 128             # TPU lane width


def _round_up(x, m):
    return ((x + m - 1) // m) * m


def _pick_tile(n_rows, tile_e):
    """Lane-aligned row tile; a multiple of 1024 when >1 grid step is needed
    so the (tile_e // 128, 128) output block keeps a sublane dim that is a
    multiple of 8."""
    if n_rows <= tile_e:
        return max(LANE, _round_up(n_rows, LANE))
    return max(1024, (tile_e // 1024) * 1024)


def _mlp_kernel(x_ref, w1_ref, b1_ref, w2_ref, b2_ref, w3_ref, b3_ref, o_ref):
    # Fused 3-layer MLP on one row tile: (TE,2H)->(TE,4H)->(TE,H)->(TE,)
    # Layer 1: bf16 MXU matmul, f32 accumulate, bias + ReLU on the VPU.
    h = jnp.dot(x_ref[...], w1_ref[...],
                preferred_element_type=jnp.float32) + b1_ref[...]
    h = jnp.maximum(h, 0.0)                         # Dropout/norm: identity (eval)
    # Layer 2: back to bf16 for the MXU, f32 accumulate.
    h = jnp.dot(h.astype(jnp.bfloat16), w2_ref[...],
                preferred_element_type=jnp.float32) + b2_ref[...]
    h = jnp.maximum(h, 0.0)                         # (TE, H) f32
    # Layer 3 has a single output column: VPU multiply by the w3 row + a
    # last-axis reduce, stored lane-dense as a (TE//128, 128) block (avoids
    # masked (TE, 1) partial stores and a 1-useful-column MXU pass).
    n_sub, lane = o_ref.shape
    h = h.reshape(n_sub, lane, h.shape[-1])
    o_ref[...] = jnp.sum(h * w3_ref[...], axis=-1) + b3_ref[0]


def mlp_forward(x, params, tile_e=TILE_E):
    """Fused MLP([F_in, 4H, H, 1]) forward.  x: (R, F_in).  Returns (R, 1) f32."""
    R, F_in = x.shape
    (w1, b1), (w2, b2), (w3, b3) = params

    tile_e = _pick_tile(R, tile_e)
    r_pad = _round_up(R, tile_e)

    x = x.astype(jnp.bfloat16)
    if r_pad != R:
        # Callers that pre-pad the cheap index array never hit this copy.
        x = jnp.pad(x, ((0, r_pad - R), (0, 0)))

    w1 = w1.astype(jnp.bfloat16)
    w2 = w2.astype(jnp.bfloat16)
    w3r = w3.reshape(1, -1).astype(jnp.float32)   # (1, H) row for the VPU
    b3s = b3.reshape(-1).astype(jnp.float32)      # (1,) scalar -> SMEM

    grid = (r_pad // tile_e,)
    out = pl.pallas_call(
        _mlp_kernel,
        out_shape=jax.ShapeDtypeStruct((r_pad // LANE, LANE), jnp.float32),
        grid_spec=pltpu.PrefetchScalarGridSpec(
            num_scalar_prefetch=0,
            grid=grid,
            in_specs=[
                pl.BlockSpec((tile_e, F_in), lambda i: (i, 0)),   # x row tile
                pl.BlockSpec(w1.shape, lambda i: (0, 0)),         # small
                pl.BlockSpec(b1.shape, lambda i: (0, 0)),         # weights /
                pl.BlockSpec(w2.shape, lambda i: (0, 0)),         # biases as
                pl.BlockSpec(b2.shape, lambda i: (0, 0)),         # resident
                pl.BlockSpec(w3r.shape, lambda i: (0, 0)),        # VMEM blocks
                pl.BlockSpec(memory_space=pltpu.MemorySpace.SMEM),  # b3 scalar
            ],
            out_specs=pl.BlockSpec((tile_e // LANE, LANE), lambda i: (i, 0)),
        ),
        compiler_params=pltpu.CompilerParams(
            dimension_semantics=("parallel",),      # shards across TCs on v7x
            vmem_limit_bytes=32 * 1024 * 1024),     # guardrail, well under budget
    )(x, w1, b1, w2, b2, w3r, b3s)

    return out.reshape(r_pad, 1)[:R]


def _init_linear(key, fan_in, fan_out):
    # Deterministic PyTorch-nn.Linear-style init: U(-1/sqrt(fan_in), 1/sqrt(fan_in))
    kw, kb = jax.random.split(key)
    bound = 1.0 / (fan_in ** 0.5)
    w = jax.random.uniform(kw, (fan_in, fan_out), jnp.float32, -bound, bound)
    b = jax.random.uniform(kb, (1, fan_out), jnp.float32, -bound, bound)
    return w, b


def init_extractor_params(key, hidden_size, learn_edge_att):
    if learn_edge_att:
        dims = [hidden_size * 2, hidden_size * 4, hidden_size, 1]
    else:
        dims = [hidden_size * 1, hidden_size * 2, hidden_size, 1]
    keys = jax.random.split(key, len(dims) - 1)
    return [_init_linear(k, dims[i], dims[i + 1]) for i, k in enumerate(keys)]


def extractor_mlp_forward(params, emb, edge_index, batch, tile_e=TILE_E):
    """emb: (N, H) f32, edge_index: (2, E) int32, batch: (N,) int32."""
    del batch  # only feeds the (eval-identity) InstanceNorm -- see TODO above
    if LEARN_EDGE_ATT:
        E = edge_index.shape[1]
        H = emb.shape[1]
        e_pad = _round_up(E, _pick_tile(E, tile_e))
        # Pad the cheap int32 index array (padded edges point at node 0) so the
        # big (E, 2H) feature matrix is born tile-aligned -- no zeros+set copy.
        idx = jnp.pad(edge_index, ((0, 0), (0, e_pad - E)))
        # Cast emb first so the gather already emits bf16 (halves the HBM
        # stream feeding the kernel); one gather does gather+concat:
        # emb[idx.T].reshape(e_pad, 2H) == cat([emb[col], emb[row]], -1).
        f12 = emb.astype(jnp.bfloat16)[idx.T].reshape(e_pad, 2 * H)
        return mlp_forward(f12, params, tile_e)[:E]                 # (E, 1)
    else:
        return mlp_forward(emb.astype(jnp.bfloat16), params, tile_e)  # (N, 1)


def _reference_forward(params, emb, edge_index):
    # Pure-JAX f32 reference (eval mode: norm/dropout identity).
    (w1, b1), (w2, b2), (w3, b3) = params
    col, row = edge_index[0], edge_index[1]
    f12 = jnp.concatenate([emb[col], emb[row]], axis=-1)
    h = jnp.maximum(f12 @ w1 + b1, 0.0)
    h = jnp.maximum(h @ w2 + b2, 0.0)
    return h @ w3 + b3


if __name__ == "__main__":
    key = jax.random.PRNGKey(0)
    k_emb, k_edge, k_params = jax.random.split(key, 3)

    N_NODES, N_EDGES = 16, 32
    emb = jax.random.normal(k_emb, (N_NODES, HIDDEN), jnp.float32)
    edge_index = jax.random.randint(k_edge, (2, N_EDGES), 0, N_NODES, jnp.int32)
    batch = jnp.concatenate(
        [jnp.zeros(N_NODES // 2, jnp.int32), jnp.ones(N_NODES // 2, jnp.int32)])

    params = init_extractor_params(k_params, HIDDEN, LEARN_EDGE_ATT)

    fwd = jax.jit(extractor_mlp_forward)
    att_log_logits = jax.block_until_ready(fwd(params, emb, edge_index, batch))

    assert att_log_logits.shape == (N_EDGES, 1), att_log_logits.shape
    assert bool(jnp.all(jnp.isfinite(att_log_logits)))

    ref = _reference_forward(params, emb, edge_index)
    max_err = float(jnp.max(jnp.abs(att_log_logits - ref)))
    assert jnp.allclose(att_log_logits, ref, atol=5e-2, rtol=5e-2), max_err

    print("KERNEL_OK")
</pallas_src>

<mosaic_0001>
module attributes {stable_mosaic.version = 11 : i64} {
  func.func @_mlp_kernel(%arg0: i32, %arg1: memref<128x64xbf16, #tpu.memory_space<vmem>>, %arg2: memref<64x128xbf16, #tpu.memory_space<vmem>>, %arg3: memref<1x128xf32, #tpu.memory_space<vmem>>, %arg4: memref<128x32xbf16, #tpu.memory_space<vmem>>, %arg5: memref<1x32xf32, #tpu.memory_space<vmem>>, %arg6: memref<1x32xf32, #tpu.memory_space<vmem>>, %arg7: memref<1xf32, #tpu.memory_space<smem>>, %arg8: memref<1x128xf32, #tpu.memory_space<vmem>>) attributes {dimension_semantics = [#tpu.dimension_semantics<parallel>], iteration_bounds = array<i64: 1>, scalar_prefetch = 0 : i64, scratch_operands = 0 : i64, tpu.core_type = #tpu.core_type<tc>, window_params = [{transform_indices = @transform_0, window_bounds = array<i64: 128, 64>}, {pipeline_mode = #tpu.pipeline_mode<synchronous>, transform_indices = @transform_1, window_bounds = array<i64: 64, 128>}, {pipeline_mode = #tpu.pipeline_mode<synchronous>, transform_indices = @transform_2, window_bounds = array<i64: 1, 128>}, {pipeline_mode = #tpu.pipeline_mode<synchronous>, transform_indices = @transform_3, window_bounds = array<i64: 128, 32>}, {pipeline_mode = #tpu.pipeline_mode<synchronous>, transform_indices = @transform_4, window_bounds = array<i64: 1, 32>}, {pipeline_mode = #tpu.pipeline_mode<synchronous>, transform_indices = @transform_5, window_bounds = array<i64: 1, 32>}, {transform_indices = @transform_6, window_bounds = array<i64: 1>}, {transform_indices = @transform_7, window_bounds = array<i64: 1, 128>}]} {
    %c0 = arith.constant 0 : index
    %c0_0 = arith.constant 0 : index
    %0 = vector.load %arg1[%c0, %c0_0] : memref<128x64xbf16, #tpu.memory_space<vmem>>, vector<128x64xbf16>
    %c0_1 = arith.constant 0 : index
    %c0_2 = arith.constant 0 : index
    %1 = vector.load %arg2[%c0_1, %c0_2] : memref<64x128xbf16, #tpu.memory_space<vmem>>, vector<64x128xbf16>
    %cst = arith.constant dense<0.000000e+00> : vector<128x128xf32>
    %2 = tpu.matmul %0, %1, %cst {dimension_numbers = #tpu.dot_dimension_numbers<[1], [0], [0], [1], [0, 0, 1, 1], [], []>} : vector<128x64xbf16>, vector<64x128xbf16>, vector<128x128xf32> -> vector<128x128xf32>
    %c0_3 = arith.constant 0 : index
    %c0_4 = arith.constant 0 : index
    %3 = vector.load %arg3[%c0_3, %c0_4] : memref<1x128xf32, #tpu.memory_space<vmem>>, vector<1x128xf32>
    %4 = vector.broadcast %3 : vector<1x128xf32> to vector<128x128xf32>
    %5 = arith.addf %2, %4 : vector<128x128xf32>
    %cst_5 = arith.constant 0.000000e+00 : f32
    %6 = vector.broadcast %cst_5 : f32 to vector<128x128xf32>
    %7 = arith.maximumf %5, %6 : vector<128x128xf32>
    %8 = arith.truncf %7 : vector<128x128xf32> to vector<128x128xbf16>
    %c0_6 = arith.constant 0 : index
    %c0_7 = arith.constant 0 : index
    %9 = vector.load %arg4[%c0_6, %c0_7] : memref<128x32xbf16, #tpu.memory_space<vmem>>, vector<128x32xbf16>
    %cst_8 = arith.constant dense<0.000000e+00> : vector<128x32xf32>
    %10 = tpu.matmul %8, %9, %cst_8 {dimension_numbers = #tpu.dot_dimension_numbers<[1], [0], [0], [1], [0, 0, 1, 1], [], []>} : vector<128x128xbf16>, vector<128x32xbf16>, vector<128x32xf32> -> vector<128x32xf32>
    %c0_9 = arith.constant 0 : index
    %c0_10 = arith.constant 0 : index
    %11 = vector.load %arg5[%c0_9, %c0_10] : memref<1x32xf32, #tpu.memory_space<vmem>>, vector<1x32xf32>
    %12 = vector.broadcast %11 : vector<1x32xf32> to vector<128x32xf32>
    %13 = arith.addf %10, %12 : vector<128x32xf32>
    %cst_11 = arith.constant 0.000000e+00 : f32
    %14 = vector.broadcast %cst_11 : f32 to vector<128x32xf32>
    %15 = arith.maximumf %13, %14 : vector<128x32xf32>
    %16 = vector.shape_cast %15 : vector<128x32xf32> to vector<1x128x32xf32>
    %c0_12 = arith.constant 0 : index
    %c0_13 = arith.constant 0 : index
    %17 = vector.load %arg6[%c0_12, %c0_13] : memref<1x32xf32, #tpu.memory_space<vmem>>, vector<1x32xf32>
    %18 = vector.shape_cast %17 : vector<1x32xf32> to vector<1x1x32xf32>
    %19 = vector.broadcast %18 : vector<1x1x32xf32> to vector<1x128x32xf32>
    %20 = arith.mulf %16, %19 : vector<1x128x32xf32>
    %cst_14 = arith.constant dense<0.000000e+00> : vector<1x128xf32>
    %21 = vector.multi_reduction <add>, %20, %cst_14 [2] : vector<1x128x32xf32> to vector<1x128xf32>
    %c0_15 = arith.constant 0 : index
    %22 = memref.load %arg7[%c0_15] : memref<1xf32, #tpu.memory_space<smem>>
    %23 = vector.broadcast %22 : f32 to vector<1x128xf32>
    %24 = arith.addf %21, %23 : vector<1x128xf32>
    %c0_16 = arith.constant 0 : index
    %c0_17 = arith.constant 0 : index
    %25 = vector.load %arg8[%c0_16, %c0_17] : memref<1x128xf32, #tpu.memory_space<vmem>>, vector<1x128xf32>
    tpu.vector_store %arg8[%c0_16, %c0_17], %24 {strides = array<i32>} : memref<1x128xf32, #tpu.memory_space<vmem>>, vector<1x128xf32>,
    return
  }
  func.func @transform_0(%arg0: i32) -> (i32, i32) {
    %c0_i32 = arith.constant 0 : i32
    %c0_i32_0 = arith.constant 0 : i32
    return %arg0, %c0_i32 : i32, i32
  }
  func.func @transform_1(%arg0: i32) -> (i32, i32) {
    %c0_i32 = arith.constant 0 : i32
    %c0_i32_0 = arith.constant 0 : i32
    %c0_i32_1 = arith.constant 0 : i32
    return %c0_i32, %c0_i32_0 : i32, i32
  }
  func.func @transform_2(%arg0: i32) -> (i32, i32) {
    %c0_i32 = arith.constant 0 : i32
    %c0_i32_0 = arith.constant 0 : i32
    %c0_i32_1 = arith.constant 0 : i32
    return %c0_i32, %c0_i32_0 : i32, i32
  }
  func.func @transform_3(%arg0: i32) -> (i32, i32) {
    %c0_i32 = arith.constant 0 : i32
    %c0_i32_0 = arith.constant 0 : i32
    %c0_i32_1 = arith.constant 0 : i32
    return %c0_i32, %c0_i32_0 : i32, i32
  }
  func.func @transform_4(%arg0: i32) -> (i32, i32) {
    %c0_i32 = arith.constant 0 : i32
    %c0_i32_0 = arith.constant 0 : i32
    %c0_i32_1 = arith.constant 0 : i32
    return %c0_i32, %c0_i32_0 : i32, i32
  }
  func.func @transform_5(%arg0: i32) -> (i32, i32) {
    %c0_i32 = arith.constant 0 : i32
    %c0_i32_0 = arith.constant 0 : i32
    %c0_i32_1 = arith.constant 0 : i32
    return %c0_i32, %c0_i32_0 : i32, i32
  }
  func.func @transform_6(%arg0: i32) -> i32 {
    %c0_i32 = arith.constant 0 : i32
    %c0_i32_0 = arith.constant 0 : i32
    return %c0_i32 : i32
  }
  func.func @transform_7(%arg0: i32) -> (i32, i32) {
    %c0_i32 = arith.constant 0 : i32
    %c0_i32_0 = arith.constant 0 : i32
    return %arg0, %c0_i32 : i32, i32
  }
}

</mosaic_0001>

<bundles_post_ra>
// kernel: extractor_mlp_forward.1
= control target key start
LH: loop header
LB: loop body
LE: loop exit
PB: predicated region body
PF: predicated region fallthrough
CT: control target
= control target key end

     0   :  { %vm123_vm0 = vcmask 523264   ;;  %vm476_vm1 = vcmask 261120   ;;  %vm570_vm2 = vcmask 130112   ;;  %vm577_vm3 = vcmask 195712   ;;  %s1060_s1 = inlined_call_operand.vmem [shape: bf16[64,128], index: 1, kind: input, shape index: {}]   ;;  %s1061_s0 = inlined_call_operand.vmem [shape: bf16[128,64], index: 0, kind: input, shape index: {}]   ;;  %s1062_s3 = inlined_call_operand.vmem [shape: bf16[128,32], index: 3, kind: input, shape index: {}]   ;;  %s1063_s2 = inlined_call_operand.vmem [shape: f32[1,128], index: 2, kind: input, shape index: {}]   ;;  %s1064_s4 = inlined_call_operand.vmem [shape: f32[1,32], index: 4, kind: input, shape index: {}]   ;;  %s1065_s5 = inlined_call_operand.vmem [shape: f32[1,32], index: 5, kind: input, shape index: {}]   ;;  %s1066_s6 = inlined_call_operand.<no memory space> [shape: f32[1], index: 6, kind: input, shape index: {}]   ;;  %s1067_s7 = inlined_call_operand.vmem [shape: f32[1,128], index: 7, kind: output, shape index: {}]  }
   0x1   :  { %v807_v0 = vld [vmem:[%s1060_s1] sm:$0xff]   ;;  %v808_v1 = vld [vmem:[%s1060_s1 + $0x8] sm:$0xff]   ;;  %v809_v2 = vld [vmem:[%s1060_s1 + $0x10] sm:$0xff]   ;;  %vm584_vm4 = vcmask 261312   ;;  %vm591_vm5 = vcmask 326912   ;;  %vm598_vm6 = vcmask 392512  }
   0x2   :  { %735 = vmatprep.subr.bf16.mxu0 %v807_v0  ;;  %v811_v3 = vld [vmem:[%s1061_s0] sm:$0xff]   ;;  %v810_v4 = vld [vmem:[%s1060_s1 + $0x18] sm:$0xff]   ;;  %v812_v6 = vld [vmem:[%s1061_s0 + $0x8] sm:$0xff]   ;;  %vm605_vm7 = vcmask 458112   ;;  %vm612_vm8 = vcmask 523712   ;;  %vm619_vm9 = vcmask 589312  }
   0x3   :  { %736 = vmatpush3.bf16.msra.mxu0 %v807_v0  ;;  %743 = vmatprep.mubr.msk.bf16.mxu0 %vm123_vm0, %v811_v3  ;;  %v819_v5 = vld [vmem:[%s1062_s3] sm:$0xff]   ;;  %v820_v7 = vld [vmem:[%s1062_s3 + $0x8] sm:$0xff]   ;;  %v813_v8 = vld [vmem:[%s1061_s0 + $0x10] sm:$0xff]   ;;  %vm626_vm10 = vcmask 654912   ;;  %vm633_vm11 = vcmask 720512   ;;  %vm640_vm12 = vcmask 786112  }
   0x4   :  { %737 = vmatprep.subr.bf16.mxu0 %v808_v1  ;;  %791 = vmatprep.subr.bf16.mxu1 %v819_v5  ;;  %v821_v9 = vld [vmem:[%s1062_s3 + $0x10] sm:$0xff]   ;;  %v814_v10 = vld [vmem:[%s1061_s0 + $0x18] sm:$0xff]   ;;  %v815_v11 = vld [vmem:[%s1061_s0 + $0x20] sm:$0xff]   ;;  %vm647_vm13 = vcmask 851712   ;;  %vm654_vm14 = vcmask 917312   ;;  %vm661_vm15 = vcmask 982912  }
   0x5   :  { %799 = vmatpush3.bf16.msra.mxu1 %v819_v5  ;;  %v822_v12 = vld [vmem:[%s1062_s3 + $0x18] sm:$0xff]   ;;  %v823_v13 = vld [vmem:[%s1062_s3 + $0x20] sm:$0xff]   ;;  %v816_v14 = vld [vmem:[%s1061_s0 + $0x28] sm:$0xff]  }
   0x6   :  { %792 = vmatprep.subr.bf16.mxu1 %v820_v7  ;;  %v817_v15 = vld [vmem:[%s1061_s0 + $0x30] sm:$0xff]   ;;  %v824_v16 = vld [vmem:[%s1062_s3 + $0x28] sm:$0xff]   ;;  %v818_v17 = vld [vmem:[%s1061_s0 + $0x38] sm:$0xff]  }
   0x7   :  { %738 = vmatpush3.bf16.msra.mxu0 %v808_v1  ;;  %v825_v18 = vld [vmem:[%s1062_s3 + $0x30] sm:$0xff]   ;;  %v826_v19 = vld [vmem:[%s1062_s3 + $0x38] sm:$0xff]   ;;  %v676_v20 = vld [vmem:[%s1063_s2] ss:$0 sm:$0xff] }
   0x8   :  { %739 = vmatprep.subr.bf16.mxu0 %v809_v2 }
   0x9   :  { %800 = vmatpush3.bf16.msra.mxu1 %v820_v7 }
   0xa   :  { %793 = vmatprep.subr.bf16.mxu1 %v821_v9 }
   0xb   :  { %740 = vmatpush3.bf16.msra.mxu0 %v809_v2 }
   0xc   :  { %741 = vmatprep.subr.bf16.mxu0 %v810_v4 }
   0xd   :  { %801 = vmatpush3.bf16.msra.mxu1 %v821_v9 }
   0xe   :  { %794 = vmatprep.subr.bf16.mxu1 %v822_v12 }
   0xf   :  { %742 = vmatpush3.bf16.msra.mxu0 %v810_v4 }
  0x10   :  { %759 = vmatprep.subr.bf16.mxu0 %v819_v5 }
  0x11   :  { %802 = vmatpush3.bf16.msra.mxu1 %v822_v12 }
  0x12   :  { %744 = vmatmul.mubr.msk.bf16.vlgmr.msra.gmra.mrb[0].mxu0 %vm123_vm0, %v812_v6  ;;  %795 = vmatprep.subr.bf16.mxu1 %v823_v13 }
  0x13   :  { %747 = vmatprep.mubr.msk.bf16.mxu0 %vm123_vm0, %v813_v8  ;;  %760 = vmatpush3.bf16.msra.mxu0 %v819_v5 }
  0x14   :  { %761 = vmatprep.subr.bf16.mxu0 %v820_v7 }
  0x15   :  { %803 = vmatpush3.bf16.msra.mxu1 %v823_v13 }
  0x16   :  { %796 = vmatprep.subr.bf16.mxu1 %v824_v16 }
  0x17   :  { %762 = vmatpush3.bf16.msra.mxu0 %v820_v7 }
  0x18   :  { %763 = vmatprep.subr.bf16.mxu0 %v821_v9 }
  0x19   :  { %804 = vmatpush3.bf16.msra.mxu1 %v824_v16 }
  0x1a   :  { %748 = vmatmul.mubr.msk.bf16.gmra.mrb[4].mxu0 %vm123_vm0, %v814_v10  ;;  %797 = vmatprep.subr.bf16.mxu1 %v825_v18 }
  0x1b   :  { %751 = vmatprep.mubr.msk.bf16.mxu0 %vm123_vm0, %v815_v11  ;;  %764 = vmatpush3.bf16.msra.mxu0 %v821_v9 }
  0x1c   :  { %765 = vmatprep.subr.bf16.mxu0 %v822_v12 }
  0x1d   :  { %805 = vmatpush3.bf16.msra.mxu1 %v825_v18 }
  0x1e   :  { %798 = vmatprep.subr.bf16.mxu1 %v826_v19 }
  0x1f   :  { %766 = vmatpush3.bf16.msra.mxu0 %v822_v12 }
  0x20   :  { %767 = vmatprep.subr.bf16.mxu0 %v823_v13 }
  0x21   :  { %806 = vmatpush3.bf16.msra.mxu1 %v826_v19 }
  0x22   :  { %752 = vmatmul.mubr.msk.bf16.gmra.mrb[8].mxu0 %vm123_vm0, %v816_v14 }
  0x23   :  { %755 = vmatprep.mubr.msk.bf16.mxu0 %vm123_vm0, %v817_v15  ;;  %768 = vmatpush3.bf16.msra.mxu0 %v823_v13  ;;  %v941_v13 = vld [vmem:[%s1064_s4] ss:$0 sm:$0xff] }
  0x24   :  { %769 = vmatprep.subr.bf16.mxu0 %v824_v16 }
  0x27   :  { %770 = vmatpush3.bf16.msra.mxu0 %v824_v16 }
  0x28   :  { %771 = vmatprep.subr.bf16.mxu0 %v825_v18 }
  0x2a   :  { %756 = vmatmul.mubr.msk.bf16.gmra.mrb[12].mxu0 %vm123_vm0, %v818_v17  ;;  %vm668_vm0 = vcmask 1048512  }
  0x2b   :  { %772 = vmatpush3.bf16.msra.mxu0 %v825_v18 }
  0x2c   :  { %773 = vmatprep.subr.bf16.mxu0 %v826_v19 }
  0x2f   :  { %774 = vmatpush3.bf16.msra.mxu0 %v826_v19  ;;  %v948_v19 = vld [vmem:[%s1065_s5] ss:$0 sm:$0xff] }
  0xe5   :  { %v745_v21 = vpop.f32.mrb[0].mxu0 }
  0xe6   :  { %v191_v22 = vadd.f32 %v745_v21, %v676_v20  ;;  %v182_v23 = vpop.f32.mrb[1].mxu0 }
  0xe7   :  { %v183_v24 = vadd.f32 %v676_v20, %v182_v23  ;;  %v746_v25 = vpop.f32.mrb[2].mxu0 }
  0xe8   :  { %v194_v26 = vadd.f32 %v746_v25, %v676_v20  ;;  %v185_v27 = vpop.f32.mrb[3].mxu0  ;;  %v247_v29 = vmax.f32 %v191_v22, 0.0 }
  0xe9   :  { %v186_v28 = vadd.f32 %v676_v20, %v185_v27  ;;  %v245_v31 = vmax.f32 %v183_v24, 0.0 }
  0xea   :  { %v248_v30 = vmax.f32 %v194_v26, 0.0 }
  0xeb   :  { %v246_v32 = vmax.f32 %v186_v28, 0.0 }
  0xec   :  { %v262_v33 = vpack.c.bf16 %v248_v30, %v247_v29 }
  0xed   :  { %v261_v34 = vpack.c.bf16 %v246_v32, %v245_v31  ;;  %v749_v35 = vpop.f32.mrb[4].mxu0 }
  0xee   :  { %v207_v36 = vadd.f32 %v749_v35, %v676_v20  ;;  %v198_v37 = vpop.f32.mrb[5].mxu0 }
  0xef   :  { %v199_v38 = vadd.f32 %v676_v20, %v198_v37  ;;  %v750_v39 = vpop.f32.mrb[6].mxu0  ;;  %775 = vmatprep.mubr.bf16.mxu0 %v261_v34 }
  0xf0   :  { %v210_v40 = vadd.f32 %v750_v39, %v676_v20  ;;  %v201_v41 = vpop.f32.mrb[7].mxu0  ;;  %776 = vmatmul.mubr.bf16.vlgmr.msra.gmra.mrb[16].mxu0 %v262_v33  ;;  %v251_v43 = vmax.f32 %v207_v36, 0.0 }
  0xf1   :  { %v202_v42 = vadd.f32 %v676_v20, %v201_v41  ;;  %v249_v45 = vmax.f32 %v199_v38, 0.0 }
  0xf2   :  { %v252_v44 = vmax.f32 %v210_v40, 0.0 }
  0xf3   :  { %v250_v46 = vmax.f32 %v202_v42, 0.0 }
  0xf4   :  { %v264_v47 = vpack.c.bf16 %v252_v44, %v251_v43 }
  0xf5   :  { %v753_v48 = vpop.f32.mrb[8].mxu0  ;;  %v263_v49 = vpack.c.bf16 %v250_v46, %v249_v45 }
  0xf6   :  { %v223_v50 = vadd.f32 %v753_v48, %v676_v20  ;;  %v214_v51 = vpop.f32.mrb[9].mxu0 }
  0xf7   :  { %v215_v52 = vadd.f32 %v676_v20, %v214_v51  ;;  %v754_v53 = vpop.f32.mrb[10].mxu0  ;;  %779 = vmatprep.mubr.bf16.mxu1 %v263_v49 }
  0xf8   :  { %v226_v54 = vadd.f32 %v754_v53, %v676_v20  ;;  %v217_v55 = vpop.f32.mrb[11].mxu0  ;;  %780 = vmatmul.mubr.bf16.vlgmr.msra.gmra.mrb[0].mxu1 %v264_v47  ;;  %v255_v57 = vmax.f32 %v223_v50, 0.0 }
  0xf9   :  { %v218_v56 = vadd.f32 %v676_v20, %v217_v55  ;;  %v253_v59 = vmax.f32 %v215_v52, 0.0 }
  0xfa   :  { %v256_v58 = vmax.f32 %v226_v54, 0.0 }
  0xfb   :  { %v254_v60 = vmax.f32 %v218_v56, 0.0 }
  0xfc   :  { %v266_v61 = vpack.c.bf16 %v256_v58, %v255_v57 }
  0xfd   :  { %v265_v62 = vpack.c.bf16 %v254_v60, %v253_v59  ;;  %v757_v63 = vpop.f32.mrb[12].mxu0 }
  0xfe   :  { %v239_v0 = vadd.f32 %v757_v63, %v676_v20  ;;  %v230_v1 = vpop.f32.mrb[13].mxu0 }
  0xff   :  { %v231_v2 = vadd.f32 %v676_v20, %v230_v1  ;;  %v758_v3 = vpop.f32.mrb[14].mxu0  ;;  %783 = vmatprep.mubr.bf16.mxu1 %v265_v62 }
 0x100   :  { %v242_v4 = vadd.f32 %v758_v3, %v676_v20  ;;  %v233_v5 = vpop.f32.mrb[15].mxu0  ;;  %784 = vmatmul.mubr.bf16.gmra.mrb[4].mxu1 %v266_v61  ;;  %v259_v7 = vmax.f32 %v239_v0, 0.0 }
 0x101   :  { %v234_v6 = vadd.f32 %v676_v20, %v233_v5  ;;  %v257_v9 = vmax.f32 %v231_v2, 0.0 }
 0x102   :  { %v260_v8 = vmax.f32 %v242_v4, 0.0 }
 0x103   :  { %v258_v10 = vmax.f32 %v234_v6, 0.0 }
 0x104   :  { %v268_v11 = vpack.c.bf16 %v260_v8, %v259_v7 }
 0x105   :  { %v267_v12 = vpack.c.bf16 %v258_v10, %v257_v9 }
 0x107   :  { %787 = vmatprep.mubr.bf16.mxu1 %v267_v12 }
 0x108   :  { %788 = vmatmul.mubr.bf16.gmra.mrb[8].mxu1 %v268_v11 }
 0x1c3   :  { %v777_v14 = vpop.f32.mrb[16].mxu0 }
 0x1c4   :  { %v383_v15 = vadd.f32 %v777_v14, %v941_v13  ;;  %v374_v16 = vpop.f32.mrb[17].mxu0 }
 0x1c5   :  { %v375_v17 = vadd.f32 %v941_v13, %v374_v16  ;;  %v778_v18 = vpop.f32.mrb[18].mxu0 }
 0x1c6   :  { %v439_v20 = vmax.f32 %v383_v15, 0.0  ;;  %v386_v21 = vadd.f32 %v778_v18, %v941_v13  ;;  %v377_v22 = vpop.f32.mrb[19].mxu0 }
 0x1c7   :  { %v437_v23 = vmax.f32 %v375_v17, 0.0  ;;  %v378_v24 = vadd.f32 %v941_v13, %v377_v22 }
 0x1c8   :  { %v440_v25 = vmax.f32 %v386_v21, 0.0  ;;  %v462_v26 = vmul.f32 %v948_v19, %v439_v20 }
 0x1c9   :  { %v438_v27 = vmax.f32 %v378_v24, 0.0  ;;  %v460_v28 = vmul.f32 %v948_v19, %v437_v23 }
 0x1ca   :  { %v483_v29 = vsel %vm476_vm1, %v462_v26, 0.0  ;;  %v463_v30 = vmul.f32 %v948_v19, %v440_v25 }
 0x1cb   :  { %v781_v31 = vpop.f32.mrb[0].mxu1  ;;  %484 = vadd.xlane.f32.xlu1 %v483_v29  ;;  %v477_v32 = vsel %vm476_vm1, %v460_v28, 0.0  ;;  %v461_v33 = vmul.f32 %v948_v19, %v438_v27 }
 0x1cc   :  { %v399_v34 = vadd.f32 %v781_v31, %v941_v13  ;;  %v390_v35 = vpop.f32.mrb[1].mxu1  ;;  %478 = vadd.xlane.f32.xlu0 %v477_v32  ;;  %v486_v41 = vsel %vm476_vm1, %v463_v30, 0.0  ;;  %v559_v32 = vlaneseq }
 0x1cd   :  { %v391_v36 = vadd.f32 %v941_v13, %v390_v35  ;;  %v782_v37 = vpop.f32.mrb[2].mxu1  ;;  %v480_v44 = vsel %vm476_vm1, %v461_v33, 0.0 }
 0x1ce   :  { %v443_v38 = vmax.f32 %v399_v34, 0.0  ;;  %v402_v39 = vadd.f32 %v782_v37, %v941_v13  ;;  %v393_v40 = vpop.f32.mrb[3].mxu1  ;;  %v996_v33 = vand.u32 127, %v559_v32 }
 0x1cf   :  { %v441_v42 = vmax.f32 %v391_v36, 0.0  ;;  %v394_v43 = vadd.f32 %v941_v13, %v393_v40  ;;  %487 = vadd.xlane.f32.xlu1 %v486_v41  ;;  %v999_v36 = vshrl.u32 %v559_v32, 7 }
 0x1d0   :  { %v444_v45 = vmax.f32 %v402_v39, 0.0  ;;  %481 = vadd.xlane.f32.xlu0 %v480_v44  ;;  %v466_v46 = vmul.f32 %v948_v19, %v443_v38  ;;  %v565_v35 = vadd.s32 4294967288, %v996_v33  ;;  %v572_v38 = vadd.s32 4294967280, %v996_v33 }
 0x1d1   :  { %v442_v47 = vmax.f32 %v394_v43, 0.0  ;;  %v464_v51 = vmul.f32 %v948_v19, %v441_v42  ;;  %v563_v40 = vsub.s32 %v996_v33, %v999_v36 }
 0x1d2   :  { %v495_v48 = vsel %vm476_vm1, %v466_v46, 0.0  ;;  %v467_v49 = vmul.f32 %v948_v19, %v444_v45  ;;  %v568_v39 = vsub.s32 %v565_v35, %v999_v36  ;;  %v575_v45 = vsub.s32 %v572_v38, %v999_v36 }
 0x1d3   :  { %v785_v50 = vpop.f32.mrb[4].mxu1  ;;  %v465_v55 = vmul.f32 %v948_v19, %v442_v47  ;;  %v489_v63 = vsel %vm476_vm1, %v464_v51, 0.0  ;;  %v579_v46 = vadd.s32 4294967272, %v996_v33 }
 0x1d4   :  { %v415_v52 = vadd.f32 %v785_v50, %v941_v13  ;;  %v406_v53 = vpop.f32.mrb[5].mxu1  ;;  %496 = vadd.xlane.f32.xlu0 %v495_v48  ;;  %v498_v54 = vsel %vm476_vm1, %v467_v49, 0.0  ;;  %v586_v49 = vadd.s32 4294967264, %v996_v33 }
 0x1d5   :  { %v407_v56 = vadd.f32 %v941_v13, %v406_v53  ;;  %v786_v57 = vpop.f32.mrb[6].mxu1  ;;  %499 = vadd.xlane.f32.xlu1 %v498_v54  ;;  %v492_v1 = vsel %vm476_vm1, %v465_v55, 0.0  ;;  %v600_v53 = vadd.s32 4294967248, %v996_v33  ;;  %v582_v55 = vsub.s32 %v579_v46, %v999_v36 }
 0x1d6   :  { %v447_v58 = vmax.f32 %v415_v52, 0.0  ;;  %v418_v59 = vadd.f32 %v786_v57, %v941_v13  ;;  %v409_v60 = vpop.f32.mrb[7].mxu1  ;;  %v593_v52 = vadd.s32 4294967256, %v996_v33 }
 0x1d7   :  { %v445_v61 = vmax.f32 %v407_v56, 0.0  ;;  %v410_v62 = vadd.f32 %v941_v13, %v409_v60  ;;  %v607_v60 = vadd.s32 4294967240, %v996_v33 }
 0x1d8   :  { %v448_v0 = vmax.f32 %v418_v59, 0.0  ;;  %490 = vadd.xlane.f32.xlu0 %v489_v63  ;;  %v470_v2 = vmul.f32 %v948_v19, %v447_v58  ;;  %v589_v59 = vsub.s32 %v586_v49, %v999_v36 }
 0x1d9   :  { %v446_v3 = vmax.f32 %v410_v62, 0.0  ;;  %493 = vadd.xlane.f32.xlu1 %v492_v1  ;;  %v468_v7 = vmul.f32 %v948_v19, %v445_v61  ;;  %v596_v62 = vsub.s32 %v593_v52, %v999_v36 }
 0x1da   :  { %v507_v4 = vsel %vm476_vm1, %v470_v2, 0.0  ;;  %v471_v5 = vmul.f32 %v948_v19, %v448_v0  ;;  %v603_v0 = vsub.s32 %v600_v53, %v999_v36 }
 0x1db   :  { %v789_v6 = vpop.f32.mrb[8].mxu1  ;;  %v469_v11 = vmul.f32 %v948_v19, %v446_v3  ;;  %v501_v21 = vsel %vm476_vm1, %v468_v7, 0.0 }
 0x1dc   :  { %v431_v8 = vadd.f32 %v789_v6, %v941_v13  ;;  %v422_v9 = vpop.f32.mrb[9].mxu1  ;;  %508 = vadd.xlane.f32.xlu0 %v507_v4  ;;  %v510_v10 = vsel %vm476_vm1, %v471_v5, 0.0  ;;  %v628_v5 = vadd.s32 4294967216, %v996_v33 }
 0x1dd   :  { %v423_v12 = vadd.f32 %v941_v13, %v422_v9  ;;  %v790_v14 = vpop.f32.mrb[10].mxu1  ;;  %511 = vadd.xlane.f32.xlu1 %v510_v10  ;;  %v504_v22 = vsel %vm476_vm1, %v469_v11, 0.0 }
 0x1de   :  { %v434_v15 = vadd.f32 %v790_v14, %v941_v13  ;;  %v425_v16 = vpop.f32.mrb[11].mxu1  ;;  %v451_v17 = vmax.f32 %v431_v8, 0.0  ;;  %v614_v8 = vadd.s32 4294967232, %v996_v33  ;;  %v621_v14 = vadd.s32 4294967224, %v996_v33 }
 0x1df   :  { %v449_v18 = vmax.f32 %v423_v12, 0.0  ;;  %v426_v20 = vadd.f32 %v941_v13, %v425_v16  ;;  %v635_v12 = vadd.s32 4294967208, %v996_v33 }
 0x1e0   :  { %502 = vadd.xlane.f32.xlu0 %v501_v21  ;;  %v452_v23 = vmax.f32 %v434_v15, 0.0  ;;  %v474_v28 = vmul.f32 %v948_v19, %v451_v17  ;;  %v610_v17 = vsub.s32 %v607_v60, %v999_v36 }
 0x1e1   :  { %v450_v24 = vmax.f32 %v426_v20, 0.0  ;;  %505 = vadd.xlane.f32.xlu1 %v504_v22  ;;  %v472_v25 = vmul.f32 %v948_v19, %v449_v18  ;;  %v631_v22 = vsub.s32 %v628_v5, %v999_v36 }
 0x1e2   :  { %v475_v13 = vmul.f32 %v948_v19, %v452_v23  ;;  %v519_v30 = vsel %vm476_vm1, %v474_v28, 0.0  ;;  %v617_v23 = vsub.s32 %v614_v8, %v999_v36  ;;  %v649_v28 = vadd.s32 4294967192, %v996_v33 }
 0x1e3   :  { %v513_v26 = vsel %vm476_vm1, %v472_v25, 0.0  ;;  %v473_v27 = vmul.f32 %v948_v19, %v450_v24  ;;  %v1004_v19 = vstv %s1066_s6  ;;  %v642_v24 = vadd.s32 4294967200, %v996_v33 }
 0x1e4   :  { %514 = vadd.xlane.f32.xlu0 %v513_v26  ;;  %v522_v31 = vsel %vm476_vm1, %v475_v13, 0.0  ;;  %v638_v25 = vsub.s32 %v635_v12, %v999_v36 }
 0x1e5   :  { %v516_v29 = vsel %vm476_vm1, %v473_v27, 0.0  ;;  %v624_v27 = vsub.s32 %v621_v14, %v999_v36  ;;  %v645_v38 = vsub.s32 %v642_v24, %v999_v36 }
 0x1e6   :  { %517 = vadd.xlane.f32.xlu1 %v516_v29 }
 0x1e8   :  { %520 = vadd.xlane.f32.xlu0 %v519_v30 }
 0x1ea   :  { %523 = vadd.xlane.f32.xlu1 %v522_v31 }
 0x258   :  { %v485_v34 = vpop.xlane.xlu1 %484 }
 0x259   :  { %v479_v37 = vpop.xlane.xlu0 %478  ;;  %v529_v47 = vadd.f32 %v1004_v19, %v485_v34 }
 0x25a   :  { %v527_v41 = vadd.f32 %v1004_v19, %v479_v37 }
 0x25b   :  { %v576_v58 = vrot.slane %v529_v47, %v575_v45  ;;  %v663_v47 = vadd.s32 4294967176, %v996_v33 }
 0x25c   :  { %v488_v43 = vpop.xlane.xlu1 %487  ;;  %v564_v50 = vrot.slane %v527_v41, %v563_v40 }
 0x25d   :  { %v482_v42 = vpop.xlane.xlu0 %481  ;;  %v530_v56 = vadd.f32 %v1004_v19, %v488_v43  ;;  %v652_v43 = vsub.s32 %v649_v28, %v999_v36 }
 0x25e   :  { %v528_v44 = vadd.f32 %v1004_v19, %v482_v42 }
 0x25f   :  { %v583_v3 = vrot.slane %v530_v56, %v582_v55 }
 0x260   :  { %v569_v48 = vrot.slane %v528_v44, %v568_v39  ;;  %v656_v39 = vadd.s32 4294967184, %v996_v33  ;;  %v666_v33 = vsub.s32 %v663_v47, %v999_v36 }
 0x261   :  { %v497_v51 = vpop.xlane.xlu0 %496 }
 0x262   :  { %v500_v54 = vpop.xlane.xlu1 %499  ;;  %v571_v57 = vsel %vm570_vm2, %v569_v48, %v564_v50  ;;  %v533_v6 = vadd.f32 %v1004_v19, %v497_v51 }
 0x263   :  { %v578_v63 = vsel %vm577_vm3, %v576_v58, %v571_v57  ;;  %v534_v18 = vadd.f32 %v1004_v19, %v500_v54  ;;  %v659_v54 = vsub.s32 %v656_v39, %v999_v36 }
 0x264   :  { %v585_v9 = vsel %vm584_vm4, %v583_v3, %v578_v63  ;;  %v604_v21 = vrot.slane %v533_v6, %v603_v0 }
 0x265   :  { %v491_v61 = vpop.xlane.xlu0 %490  ;;  %v611_v32 = vrot.slane %v534_v18, %v610_v17 }
 0x266   :  { %v531_v1 = vadd.f32 %v1004_v19, %v491_v61  ;;  %v494_v2 = vpop.xlane.xlu1 %493 }
 0x267   :  { %v532_v4 = vadd.f32 %v1004_v19, %v494_v2 }
 0x268   :  { %v590_v7 = vrot.slane %v531_v1, %v589_v59 }
 0x269   :  { %v597_v10 = vrot.slane %v532_v4, %v596_v62  ;;  %v509_v11 = vpop.xlane.xlu0 %508 }
 0x26a   :  { %v592_v15 = vsel %vm591_vm5, %v590_v7, %v585_v9  ;;  %v512_v16 = vpop.xlane.xlu1 %511  ;;  %v537_v13 = vadd.f32 %v1004_v19, %v509_v11 }
 0x26b   :  { %v599_v20 = vsel %vm598_vm6, %v597_v10, %v592_v15  ;;  %v538_v34 = vadd.f32 %v1004_v19, %v512_v16 }
 0x26c   :  { %v606_v29 = vsel %vm605_vm7, %v604_v21, %v599_v20  ;;  %v632_v44 = vrot.slane %v537_v13, %v631_v22 }
 0x26d   :  { %v503_v26 = vpop.xlane.xlu0 %502  ;;  %v613_v40 = vsel %vm612_vm8, %v611_v32, %v606_v29  ;;  %v639_v48 = vrot.slane %v538_v34, %v638_v25 }
 0x26e   :  { %v535_v30 = vadd.f32 %v1004_v19, %v503_v26  ;;  %v506_v31 = vpop.xlane.xlu1 %505 }
 0x26f   :  { %v536_v35 = vadd.f32 %v1004_v19, %v506_v31 }
 0x270   :  { %v618_v37 = vrot.slane %v535_v30, %v617_v23 }
 0x271   :  { %v625_v41 = vrot.slane %v536_v35, %v624_v27  ;;  %v515_v42 = vpop.xlane.xlu0 %514 }
 0x272   :  { %v620_v45 = vsel %vm619_vm9, %v618_v37, %v613_v40  ;;  %v539_v46 = vadd.f32 %v1004_v19, %v515_v42 }
 0x273   :  { %v627_v49 = vsel %vm626_vm10, %v625_v41, %v620_v45  ;;  %v518_v50 = vpop.xlane.xlu1 %517 }
 0x274   :  { %v634_v51 = vsel %vm633_vm11, %v632_v44, %v627_v49  ;;  %v646_v52 = vrot.slane %v539_v46, %v645_v38  ;;  %v540_v53 = vadd.f32 %v1004_v19, %v518_v50 }
 0x275   :  { %v641_v55 = vsel %vm640_vm12, %v639_v48, %v634_v51  ;;  %v521_v56 = vpop.xlane.xlu0 %520 }
 0x276   :  { %v648_v57 = vsel %vm647_vm13, %v646_v52, %v641_v55  ;;  %v653_v58 = vrot.slane %v540_v53, %v652_v43  ;;  %v541_v59 = vadd.f32 %v1004_v19, %v521_v56 }
 0x277   :  { %v524_v60 = vpop.xlane.xlu1 %523 }
 0x278   :  { %v655_v61 = vsel %vm654_vm14, %v653_v58, %v648_v57  ;;  %v660_v62 = vrot.slane %v541_v59, %v659_v54  ;;  %v542_v63 = vadd.f32 %v1004_v19, %v524_v60 }
 0x27a   :  { %v662_v0 = vsel %vm661_vm15, %v660_v62, %v655_v61  ;;  %v667_v1 = vrot.slane %v542_v63, %v666_v33 }
 0x27c   :  { %v669_v2 = vsel %vm668_vm0, %v667_v1, %v662_v0 }
 0x27d   :  { %671 = vst [vmem:[%s1067_s7] sm:$0x1] %v669_v2 }

</bundles_post_ra>
